<compile_context>
chip_gen: v5e
topology: v5e:2x2
jax: 0.10.0
libtpu: 0.0.40
codegen_flags: <defaults>
</compile_context>

<pallas_src>
import functools

import jax
import jax.numpy as jnp
from jax.experimental import pallas as pl
from jax.experimental.pallas import tpu as pltpu

LN_EPS = 1e-5


def _layer_norm_f32(x, gamma, beta):
    """Row-wise LayerNorm over the last (feature) axis, all in f32."""
    mu = jnp.mean(x, axis=-1, keepdims=True)
    xc = x - mu
    var = jnp.mean(xc * xc, axis=-1, keepdims=True)
    return xc * jax.lax.rsqrt(var + LN_EPS) * gamma + beta


def encoder_block_kernel(src_ref, g1_ref, be1_ref,
                         wqkv_ref, bqkv_ref, bias_ref,
                         g2_ref, be2_ref,
                         w1_ref, b1_ref, w2_ref, b2_ref,
                         o_ref, *, n_heads):
    """One batch grid step: LN1 + MHSA + residual + LN2(src) + FFN + residual.

    src_ref  : (1, T, C)  f32   input block
    g1/be1   : (1, C)     f32   LayerNorm-1 gamma / beta
    wqkv_ref : (C, 3C)    bf16  fused QKV weights (sqrt(C) folded into Q cols)
    bqkv_ref : (1, 3C)    f32   fused QKV bias   (sqrt(C) folded into Q part)
    bias_ref : (1, T, T)  bf16  additive attention bias (0 or -1e9)
    g2/be2   : (1, C)     f32   LayerNorm-2 gamma / beta
    w1/b1    : (C, 4C) bf16 / (1, 4C) f32
    w2/b2    : (4C, C) bf16 / (1, C)  f32
    o_ref    : (1, T, C)  f32   output block (lane-dense full store)
    """
    src = src_ref[0]                                         # (T, C) f32
    T, C = src.shape
    D = C // n_heads

    # ---- LN1 + fused QKV projection for all heads: (T,C) @ (C,3C) ----
    xn1 = _layer_norm_f32(src, g1_ref[...], be1_ref[...])
    qkv = jnp.dot(xn1.astype(jnp.bfloat16), wqkv_ref[...],
                  preferred_element_type=jnp.float32) + bqkv_ref[...]   # (T,3C)

    bias = bias_ref[0].astype(jnp.float32)                   # (T, T)

    # ---- per-head attention (static loop; static lane-contiguous slices) ----
    heads = []
    for h in range(n_heads):
        q = qkv[:, h * D:(h + 1) * D]                        # (T, D), scale folded
        k = qkv[:, C + h * D:C + (h + 1) * D]
        v = qkv[:, 2 * C + h * D:2 * C + (h + 1) * D]

        # scores = q @ k^T without an explicit XLU transpose of k.
        s = jax.lax.dot_general(
            q.astype(jnp.bfloat16), k.astype(jnp.bfloat16),
            dimension_numbers=(((1,), (1,)), ((), ())),
            preferred_element_type=jnp.float32) + bias       # (T, T) f32

        # Numerically stable softmax; normalization deferred past PV matmul.
        m = jnp.max(s, axis=-1, keepdims=True)
        e = jnp.exp(s - m)                                   # (T, T) f32
        l = jnp.sum(e, axis=-1, keepdims=True)               # >= 1 (max subtracted)

        y = jnp.dot(e.astype(jnp.bfloat16), v.astype(jnp.bfloat16),
                    preferred_element_type=jnp.float32)      # (T, D) f32
        heads.append(y * pl.reciprocal(l, approx=True))      # EUP normalize
    sa = jnp.concatenate(heads, axis=-1)                     # (T, C) f32

    # ---- LN2(src) + FeedForward + both residuals ----
    xn2 = _layer_norm_f32(src, g2_ref[...], be2_ref[...])    # module: LN2(src)
    hdn = jnp.dot(xn2.astype(jnp.bfloat16), w1_ref[...],
                  preferred_element_type=jnp.float32) + b1_ref[...]     # (T, 4C)
    hdn = jnp.maximum(hdn, 0.0)                              # ReLU
    ff = jnp.dot(hdn.astype(jnp.bfloat16), w2_ref[...],
                 preferred_element_type=jnp.float32) + b2_ref[...]      # (T, C)

    # TODO(synk): config.dropout — treated as inference-mode identity here.
    o_ref[0] = src + sa + ff


def encoder_block_forward(src, src_mask, params, *, n_heads):
    """EncoderBlock forward: one fused Pallas kernel over the batch grid."""
    B, T, C = src.shape
    H = n_heads
    assert C % H == 0
    f32 = jnp.float32
    src = src.astype(f32)

    # Module computes scores / C**-0.5, i.e. * sqrt(C).  Fold it into Wq/bq
    # once here (weight-side layout plumbing, not a per-call activation scale).
    inv_scale = float(C) ** 0.5
    scale_vec = jnp.concatenate([jnp.full((C,), inv_scale, f32),
                                 jnp.ones((2 * C,), f32)])
    w_qkv = (params["w_qkv"].astype(f32) * scale_vec[None, :]).astype(jnp.bfloat16)
    b_qkv = (params["b_qkv"].astype(f32) * scale_vec).reshape(1, 3 * C)

    g1 = params["ln1_g"].astype(f32).reshape(1, C)
    be1 = params["ln1_b"].astype(f32).reshape(1, C)
    g2 = params["ln2_g"].astype(f32).reshape(1, C)
    be2 = params["ln2_b"].astype(f32).reshape(1, C)

    w1 = params["w1"].astype(jnp.bfloat16)                   # (C, 4C)
    b1 = params["b1"].astype(f32).reshape(1, 4 * C)
    w2 = params["w2"].astype(jnp.bfloat16)                   # (4C, C)
    b2 = params["b2"].astype(f32).reshape(1, C)

    # Additive attention bias built once, outside the kernel, in bf16.
    # TODO(synk): for padding-only masks, pass per-row lengths via scalar
    # prefetch and build the bias in-kernel from broadcasted_iota to drop this
    # O(B*T^2) HBM input entirely.
    mask_b = jnp.broadcast_to(src_mask, (B, T, T))
    attn_bias = jnp.where(mask_b == 0, -1e9, 0.0).astype(jnp.bfloat16)

    out = pl.pallas_call(
        functools.partial(encoder_block_kernel, n_heads=H),
        out_shape=jax.ShapeDtypeStruct((B, T, C), f32),
        grid=(B,),
        in_specs=[
            pl.BlockSpec((1, T, C), lambda b: (b, 0, 0)),     # src
            pl.BlockSpec((1, C), lambda b: (0, 0)),           # ln1 gamma
            pl.BlockSpec((1, C), lambda b: (0, 0)),           # ln1 beta
            pl.BlockSpec((C, 3 * C), lambda b: (0, 0)),       # fused W_qkv
            pl.BlockSpec((1, 3 * C), lambda b: (0, 0)),       # fused b_qkv
            pl.BlockSpec((1, T, T), lambda b: (b, 0, 0)),     # additive mask bias
            pl.BlockSpec((1, C), lambda b: (0, 0)),           # ln2 gamma
            pl.BlockSpec((1, C), lambda b: (0, 0)),           # ln2 beta
            pl.BlockSpec((C, 4 * C), lambda b: (0, 0)),       # W1
            pl.BlockSpec((1, 4 * C), lambda b: (0, 0)),       # b1
            pl.BlockSpec((4 * C, C), lambda b: (0, 0)),       # W2
            pl.BlockSpec((1, C), lambda b: (0, 0)),           # b2
        ],
        out_specs=pl.BlockSpec((1, T, C), lambda b: (b, 0, 0)),
        compiler_params=pltpu.CompilerParams(
            dimension_semantics=("parallel",)),
    )(src, g1, be1, w_qkv, b_qkv, attn_bias, g2, be2, w1, b1, w2, b2)
    return out


def reference_encoder_block(src, src_mask, params, *, n_heads):
    """Pure-JAX f32 reference mirroring the PyTorch EncoderBlock.forward."""
    B, T, C = src.shape
    H, D = n_heads, C // n_heads

    def ln(x, g, b):
        mu = x.mean(-1, keepdims=True)
        var = ((x - mu) ** 2).mean(-1, keepdims=True)
        return (x - mu) * jax.lax.rsqrt(var + LN_EPS) * g + b

    xn = ln(src, params["ln1_g"], params["ln1_b"])
    qkv = xn @ params["w_qkv"] + params["b_qkv"]
    q, k, v = jnp.split(qkv, 3, axis=-1)
    q = q.reshape(B, T, H, D).transpose(0, 2, 1, 3)
    k = k.reshape(B, T, H, D).transpose(0, 2, 1, 3)
    v = v.reshape(B, T, H, D).transpose(0, 2, 1, 3)
    att = jnp.einsum("bhqd,bhkd->bhqk", q, k) / (C ** (-0.5))
    m = jnp.broadcast_to(src_mask, (B, T, T))[:, None, :, :]
    att = jnp.where(m == 0, -1e9, att)
    att = jax.nn.softmax(att, axis=-1)
    sa = jnp.einsum("bhqk,bhkd->bhqd", att, v).transpose(0, 2, 1, 3).reshape(B, T, C)
    x = src + sa
    x2 = ln(src, params["ln2_g"], params["ln2_b"])           # module uses ln2(src)
    h = jax.nn.relu(x2 @ params["w1"] + params["b1"])
    ff = h @ params["w2"] + params["b2"]
    return x + ff


if __name__ == "__main__":
    # Small config implied by the module: emb_dim=C, n_heads=H, seq=T, bias=True.
    B, T, C, H = 2, 8, 32, 4

    key = jax.random.PRNGKey(0)
    keys = jax.random.split(key, 12)

    src = jax.random.normal(keys[0], (B, T, C), dtype=jnp.float32)

    params = {
        "w_qkv": 0.02 * jax.random.normal(keys[1], (C, 3 * C), jnp.float32),
        "b_qkv": 0.02 * jax.random.normal(keys[2], (3 * C,), jnp.float32),
        "ln1_g": 1.0 + 0.1 * jax.random.normal(keys[3], (C,), jnp.float32),
        "ln1_b": 0.1 * jax.random.normal(keys[4], (C,), jnp.float32),
        "ln2_g": 1.0 + 0.1 * jax.random.normal(keys[5], (C,), jnp.float32),
        "ln2_b": 0.1 * jax.random.normal(keys[6], (C,), jnp.float32),
        "w1": 0.02 * jax.random.normal(keys[7], (C, 4 * C), jnp.float32),
        "b1": 0.02 * jax.random.normal(keys[8], (4 * C,), jnp.float32),
        "w2": 0.02 * jax.random.normal(keys[9], (4 * C, C), jnp.float32),
        "b2": 0.02 * jax.random.normal(keys[10], (C,), jnp.float32),
    }

    # Padding-style mask (B, T, T); guarantee the diagonal so no row is fully masked.
    mask = (jax.random.uniform(keys[11], (B, T, T)) > 0.2).astype(jnp.int32)
    mask = jnp.maximum(mask, jnp.eye(T, dtype=jnp.int32)[None, :, :])

    out = encoder_block_forward(src, mask, params, n_heads=H)
    out = jax.block_until_ready(out)

    out_ref = reference_encoder_block(src, mask, params, n_heads=H)
    assert out.shape == (B, T, C)
    # Kernel feeds the MXU bf16 operands (f32 accumulation), so compare against
    # the pure-f32 reference with a bf16-appropriate tolerance.
    assert jnp.allclose(out, out_ref, atol=2e-2, rtol=2e-2), (
        "max abs err vs reference: %f" % float(jnp.max(jnp.abs(out - out_ref))))

    print("KERNEL_OK")
</pallas_src>

<mosaic_0001>
module attributes {stable_mosaic.version = 11 : i64} {
  func.func @encoder_block_kernel(%arg0: i32, %arg1: memref<1x8x32xf32, #tpu.memory_space<vmem>>, %arg2: memref<1x32xf32, #tpu.memory_space<vmem>>, %arg3: memref<1x32xf32, #tpu.memory_space<vmem>>, %arg4: memref<32x96xbf16, #tpu.memory_space<vmem>>, %arg5: memref<1x96xf32, #tpu.memory_space<vmem>>, %arg6: memref<1x8x8xbf16, #tpu.memory_space<vmem>>, %arg7: memref<1x32xf32, #tpu.memory_space<vmem>>, %arg8: memref<1x32xf32, #tpu.memory_space<vmem>>, %arg9: memref<32x128xbf16, #tpu.memory_space<vmem>>, %arg10: memref<1x128xf32, #tpu.memory_space<vmem>>, %arg11: memref<128x32xbf16, #tpu.memory_space<vmem>>, %arg12: memref<1x32xf32, #tpu.memory_space<vmem>>, %arg13: memref<1x8x32xf32, #tpu.memory_space<vmem>>) attributes {dimension_semantics = [#tpu.dimension_semantics<parallel>], iteration_bounds = array<i64: 2>, scalar_prefetch = 0 : i64, scratch_operands = 0 : i64, tpu.core_type = #tpu.core_type<tc>, window_params = [{transform_indices = @transform_0, window_bounds = array<i64: 1, 8, 32>}, {pipeline_mode = #tpu.pipeline_mode<synchronous>, transform_indices = @transform_1, window_bounds = array<i64: 1, 32>}, {pipeline_mode = #tpu.pipeline_mode<synchronous>, transform_indices = @transform_2, window_bounds = array<i64: 1, 32>}, {pipeline_mode = #tpu.pipeline_mode<synchronous>, transform_indices = @transform_3, window_bounds = array<i64: 32, 96>}, {pipeline_mode = #tpu.pipeline_mode<synchronous>, transform_indices = @transform_4, window_bounds = array<i64: 1, 96>}, {transform_indices = @transform_5, window_bounds = array<i64: 1, 8, 8>}, {pipeline_mode = #tpu.pipeline_mode<synchronous>, transform_indices = @transform_6, window_bounds = array<i64: 1, 32>}, {pipeline_mode = #tpu.pipeline_mode<synchronous>, transform_indices = @transform_7, window_bounds = array<i64: 1, 32>}, {pipeline_mode = #tpu.pipeline_mode<synchronous>, transform_indices = @transform_8, window_bounds = array<i64: 32, 128>}, {pipeline_mode = #tpu.pipeline_mode<synchronous>, transform_indices = @transform_9, window_bounds = array<i64: 1, 128>}, {pipeline_mode = #tpu.pipeline_mode<synchronous>, transform_indices = @transform_10, window_bounds = array<i64: 128, 32>}, {pipeline_mode = #tpu.pipeline_mode<synchronous>, transform_indices = @transform_11, window_bounds = array<i64: 1, 32>}, {transform_indices = @transform_12, window_bounds = array<i64: 1, 8, 32>}]} {
    %c0 = arith.constant 0 : index
    %c0_0 = arith.constant 0 : index
    %c0_1 = arith.constant 0 : index
    %0 = vector.load %arg1[%c0, %c0_0, %c0_1] : memref<1x8x32xf32, #tpu.memory_space<vmem>>, vector<1x8x32xf32>
    %1 = vector.shape_cast %0 : vector<1x8x32xf32> to vector<8x32xf32>
    %c0_2 = arith.constant 0 : index
    %c0_3 = arith.constant 0 : index
    %2 = vector.load %arg2[%c0_2, %c0_3] : memref<1x32xf32, #tpu.memory_space<vmem>>, vector<1x32xf32>
    %c0_4 = arith.constant 0 : index
    %c0_5 = arith.constant 0 : index
    %3 = vector.load %arg3[%c0_4, %c0_5] : memref<1x32xf32, #tpu.memory_space<vmem>>, vector<1x32xf32>
    %cst = arith.constant dense<0.000000e+00> : vector<8xf32>
    %4 = vector.multi_reduction <add>, %1, %cst [1] : vector<8x32xf32> to vector<8xf32>
    %5 = vector.shape_cast %4 : vector<8xf32> to vector<8x1xf32>
    %cst_6 = arith.constant 3.200000e+01 : f32
    %6 = vector.broadcast %cst_6 : f32 to vector<8x1xf32>
    %7 = arith.divf %5, %6 : vector<8x1xf32>
    %8 = vector.broadcast %7 : vector<8x1xf32> to vector<8x32xf32>
    %9 = arith.subf %1, %8 : vector<8x32xf32>
    %10 = arith.mulf %9, %9 : vector<8x32xf32>
    %cst_7 = arith.constant dense<0.000000e+00> : vector<8xf32>
    %11 = vector.multi_reduction <add>, %10, %cst_7 [1] : vector<8x32xf32> to vector<8xf32>
    %12 = vector.shape_cast %11 : vector<8xf32> to vector<8x1xf32>
    %cst_8 = arith.constant 3.200000e+01 : f32
    %13 = vector.broadcast %cst_8 : f32 to vector<8x1xf32>
    %14 = arith.divf %12, %13 : vector<8x1xf32>
    %cst_9 = arith.constant 9.99999974E-6 : f32
    %15 = vector.broadcast %cst_9 : f32 to vector<8x1xf32>
    %16 = arith.addf %14, %15 : vector<8x1xf32>
    %17 = math.rsqrt %16 : vector<8x1xf32>
    %18 = vector.broadcast %17 : vector<8x1xf32> to vector<8x32xf32>
    %19 = arith.mulf %9, %18 : vector<8x32xf32>
    %20 = vector.broadcast %2 : vector<1x32xf32> to vector<8x32xf32>
    %21 = arith.mulf %19, %20 : vector<8x32xf32>
    %22 = vector.broadcast %3 : vector<1x32xf32> to vector<8x32xf32>
    %23 = arith.addf %21, %22 : vector<8x32xf32>
    %24 = arith.truncf %23 : vector<8x32xf32> to vector<8x32xbf16>
    %c0_10 = arith.constant 0 : index
    %c0_11 = arith.constant 0 : index
    %25 = vector.load %arg4[%c0_10, %c0_11] : memref<32x96xbf16, #tpu.memory_space<vmem>>, vector<32x96xbf16>
    %cst_12 = arith.constant dense<0.000000e+00> : vector<8x96xf32>
    %26 = tpu.matmul %24, %25, %cst_12 {dimension_numbers = #tpu.dot_dimension_numbers<[1], [0], [0], [1], [0, 0, 1, 1], [], []>} : vector<8x32xbf16>, vector<32x96xbf16>, vector<8x96xf32> -> vector<8x96xf32>
    %c0_13 = arith.constant 0 : index
    %c0_14 = arith.constant 0 : index
    %27 = vector.load %arg5[%c0_13, %c0_14] : memref<1x96xf32, #tpu.memory_space<vmem>>, vector<1x96xf32>
    %28 = vector.broadcast %27 : vector<1x96xf32> to vector<8x96xf32>
    %29 = arith.addf %26, %28 : vector<8x96xf32>
    %c0_15 = arith.constant 0 : index
    %c0_16 = arith.constant 0 : index
    %c0_17 = arith.constant 0 : index
    %30 = vector.load %arg6[%c0_15, %c0_16, %c0_17] : memref<1x8x8xbf16, #tpu.memory_space<vmem>>, vector<1x8x8xbf16>
    %31 = vector.shape_cast %30 : vector<1x8x8xbf16> to vector<8x8xbf16>
    %32 = arith.extf %31 : vector<8x8xbf16> to vector<8x8xf32>
    %33 = vector.extract_strided_slice %29 {offsets = [0, 0], sizes = [8, 8], strides = [1, 1]} : vector<8x96xf32> to vector<8x8xf32>
    %34 = vector.extract_strided_slice %29 {offsets = [0, 32], sizes = [8, 8], strides = [1, 1]} : vector<8x96xf32> to vector<8x8xf32>
    %35 = vector.extract_strided_slice %29 {offsets = [0, 64], sizes = [8, 8], strides = [1, 1]} : vector<8x96xf32> to vector<8x8xf32>
    %36 = arith.truncf %33 : vector<8x8xf32> to vector<8x8xbf16>
    %37 = arith.truncf %34 : vector<8x8xf32> to vector<8x8xbf16>
    %cst_18 = arith.constant dense<0.000000e+00> : vector<8x8xf32>
    %38 = tpu.matmul %36, %37, %cst_18 {dimension_numbers = #tpu.dot_dimension_numbers<[1], [1], [0], [0], [0, 0, 1, 0], [], []>} : vector<8x8xbf16>, vector<8x8xbf16>, vector<8x8xf32> -> vector<8x8xf32>
    %39 = arith.addf %38, %32 : vector<8x8xf32>
    %cst_19 = arith.constant dense<0xFF800000> : vector<8xf32>
    %40 = vector.multi_reduction <maximumf>, %39, %cst_19 [1] : vector<8x8xf32> to vector<8xf32>
    %41 = vector.shape_cast %40 : vector<8xf32> to vector<8x1xf32>
    %42 = vector.broadcast %41 : vector<8x1xf32> to vector<8x8xf32>
    %43 = arith.subf %39, %42 : vector<8x8xf32>
    %44 = math.exp %43 : vector<8x8xf32>
    %cst_20 = arith.constant dense<0.000000e+00> : vector<8xf32>
    %45 = vector.multi_reduction <add>, %44, %cst_20 [1] : vector<8x8xf32> to vector<8xf32>
    %46 = vector.shape_cast %45 : vector<8xf32> to vector<8x1xf32>
    %47 = arith.truncf %44 : vector<8x8xf32> to vector<8x8xbf16>
    %48 = arith.truncf %35 : vector<8x8xf32> to vector<8x8xbf16>
    %cst_21 = arith.constant dense<0.000000e+00> : vector<8x8xf32>
    %49 = tpu.matmul %47, %48, %cst_21 {dimension_numbers = #tpu.dot_dimension_numbers<[1], [0], [0], [1], [0, 0, 1, 1], [], []>} : vector<8x8xbf16>, vector<8x8xbf16>, vector<8x8xf32> -> vector<8x8xf32>
    %50 = tpu.reciprocal %46 {approx = true} : vector<8x1xf32> -> vector<8x1xf32>
    %51 = vector.broadcast %50 : vector<8x1xf32> to vector<8x8xf32>
    %52 = arith.mulf %49, %51 : vector<8x8xf32>
    %53 = vector.extract_strided_slice %29 {offsets = [0, 8], sizes = [8, 8], strides = [1, 1]} : vector<8x96xf32> to vector<8x8xf32>
    %54 = vector.extract_strided_slice %29 {offsets = [0, 40], sizes = [8, 8], strides = [1, 1]} : vector<8x96xf32> to vector<8x8xf32>
    %55 = vector.extract_strided_slice %29 {offsets = [0, 72], sizes = [8, 8], strides = [1, 1]} : vector<8x96xf32> to vector<8x8xf32>
    %56 = arith.truncf %53 : vector<8x8xf32> to vector<8x8xbf16>
    %57 = arith.truncf %54 : vector<8x8xf32> to vector<8x8xbf16>
    %cst_22 = arith.constant dense<0.000000e+00> : vector<8x8xf32>
    %58 = tpu.matmul %56, %57, %cst_22 {dimension_numbers = #tpu.dot_dimension_numbers<[1], [1], [0], [0], [0, 0, 1, 0], [], []>} : vector<8x8xbf16>, vector<8x8xbf16>, vector<8x8xf32> -> vector<8x8xf32>
    %59 = arith.addf %58, %32 : vector<8x8xf32>
    %cst_23 = arith.constant dense<0xFF800000> : vector<8xf32>
    %60 = vector.multi_reduction <maximumf>, %59, %cst_23 [1] : vector<8x8xf32> to vector<8xf32>
    %61 = vector.shape_cast %60 : vector<8xf32> to vector<8x1xf32>
    %62 = vector.broadcast %61 : vector<8x1xf32> to vector<8x8xf32>
    %63 = arith.subf %59, %62 : vector<8x8xf32>
    %64 = math.exp %63 : vector<8x8xf32>
    %cst_24 = arith.constant dense<0.000000e+00> : vector<8xf32>
    %65 = vector.multi_reduction <add>, %64, %cst_24 [1] : vector<8x8xf32> to vector<8xf32>
    %66 = vector.shape_cast %65 : vector<8xf32> to vector<8x1xf32>
    %67 = arith.truncf %64 : vector<8x8xf32> to vector<8x8xbf16>
    %68 = arith.truncf %55 : vector<8x8xf32> to vector<8x8xbf16>
    %cst_25 = arith.constant dense<0.000000e+00> : vector<8x8xf32>
    %69 = tpu.matmul %67, %68, %cst_25 {dimension_numbers = #tpu.dot_dimension_numbers<[1], [0], [0], [1], [0, 0, 1, 1], [], []>} : vector<8x8xbf16>, vector<8x8xbf16>, vector<8x8xf32> -> vector<8x8xf32>
    %70 = tpu.reciprocal %66 {approx = true} : vector<8x1xf32> -> vector<8x1xf32>
    %71 = vector.broadcast %70 : vector<8x1xf32> to vector<8x8xf32>
    %72 = arith.mulf %69, %71 : vector<8x8xf32>
    %73 = vector.extract_strided_slice %29 {offsets = [0, 16], sizes = [8, 8], strides = [1, 1]} : vector<8x96xf32> to vector<8x8xf32>
    %74 = vector.extract_strided_slice %29 {offsets = [0, 48], sizes = [8, 8], strides = [1, 1]} : vector<8x96xf32> to vector<8x8xf32>
    %75 = vector.extract_strided_slice %29 {offsets = [0, 80], sizes = [8, 8], strides = [1, 1]} : vector<8x96xf32> to vector<8x8xf32>
    %76 = arith.truncf %73 : vector<8x8xf32> to vector<8x8xbf16>
    %77 = arith.truncf %74 : vector<8x8xf32> to vector<8x8xbf16>
    %cst_26 = arith.constant dense<0.000000e+00> : vector<8x8xf32>
    %78 = tpu.matmul %76, %77, %cst_26 {dimension_numbers = #tpu.dot_dimension_numbers<[1], [1], [0], [0], [0, 0, 1, 0], [], []>} : vector<8x8xbf16>, vector<8x8xbf16>, vector<8x8xf32> -> vector<8x8xf32>
    %79 = arith.addf %78, %32 : vector<8x8xf32>
    %cst_27 = arith.constant dense<0xFF800000> : vector<8xf32>
    %80 = vector.multi_reduction <maximumf>, %79, %cst_27 [1] : vector<8x8xf32> to vector<8xf32>
    %81 = vector.shape_cast %80 : vector<8xf32> to vector<8x1xf32>
    %82 = vector.broadcast %81 : vector<8x1xf32> to vector<8x8xf32>
    %83 = arith.subf %79, %82 : vector<8x8xf32>
    %84 = math.exp %83 : vector<8x8xf32>
    %cst_28 = arith.constant dense<0.000000e+00> : vector<8xf32>
    %85 = vector.multi_reduction <add>, %84, %cst_28 [1] : vector<8x8xf32> to vector<8xf32>
    %86 = vector.shape_cast %85 : vector<8xf32> to vector<8x1xf32>
    %87 = arith.truncf %84 : vector<8x8xf32> to vector<8x8xbf16>
    %88 = arith.truncf %75 : vector<8x8xf32> to vector<8x8xbf16>
    %cst_29 = arith.constant dense<0.000000e+00> : vector<8x8xf32>
    %89 = tpu.matmul %87, %88, %cst_29 {dimension_numbers = #tpu.dot_dimension_numbers<[1], [0], [0], [1], [0, 0, 1, 1], [], []>} : vector<8x8xbf16>, vector<8x8xbf16>, vector<8x8xf32> -> vector<8x8xf32>
    %90 = tpu.reciprocal %86 {approx = true} : vector<8x1xf32> -> vector<8x1xf32>
    %91 = vector.broadcast %90 : vector<8x1xf32> to vector<8x8xf32>
    %92 = arith.mulf %89, %91 : vector<8x8xf32>
    %93 = vector.extract_strided_slice %29 {offsets = [0, 24], sizes = [8, 8], strides = [1, 1]} : vector<8x96xf32> to vector<8x8xf32>
    %94 = vector.extract_strided_slice %29 {offsets = [0, 56], sizes = [8, 8], strides = [1, 1]} : vector<8x96xf32> to vector<8x8xf32>
    %95 = vector.extract_strided_slice %29 {offsets = [0, 88], sizes = [8, 8], strides = [1, 1]} : vector<8x96xf32> to vector<8x8xf32>
    %96 = arith.truncf %93 : vector<8x8xf32> to vector<8x8xbf16>
    %97 = arith.truncf %94 : vector<8x8xf32> to vector<8x8xbf16>
    %cst_30 = arith.constant dense<0.000000e+00> : vector<8x8xf32>
    %98 = tpu.matmul %96, %97, %cst_30 {dimension_numbers = #tpu.dot_dimension_numbers<[1], [1], [0], [0], [0, 0, 1, 0], [], []>} : vector<8x8xbf16>, vector<8x8xbf16>, vector<8x8xf32> -> vector<8x8xf32>
    %99 = arith.addf %98, %32 : vector<8x8xf32>
    %cst_31 = arith.constant dense<0xFF800000> : vector<8xf32>
    %100 = vector.multi_reduction <maximumf>, %99, %cst_31 [1] : vector<8x8xf32> to vector<8xf32>
    %101 = vector.shape_cast %100 : vector<8xf32> to vector<8x1xf32>
    %102 = vector.broadcast %101 : vector<8x1xf32> to vector<8x8xf32>
    %103 = arith.subf %99, %102 : vector<8x8xf32>
    %104 = math.exp %103 : vector<8x8xf32>
    %cst_32 = arith.constant dense<0.000000e+00> : vector<8xf32>
    %105 = vector.multi_reduction <add>, %104, %cst_32 [1] : vector<8x8xf32> to vector<8xf32>
    %106 = vector.shape_cast %105 : vector<8xf32> to vector<8x1xf32>
    %107 = arith.truncf %104 : vector<8x8xf32> to vector<8x8xbf16>
    %108 = arith.truncf %95 : vector<8x8xf32> to vector<8x8xbf16>
    %cst_33 = arith.constant dense<0.000000e+00> : vector<8x8xf32>
    %109 = tpu.matmul %107, %108, %cst_33 {dimension_numbers = #tpu.dot_dimension_numbers<[1], [0], [0], [1], [0, 0, 1, 1], [], []>} : vector<8x8xbf16>, vector<8x8xbf16>, vector<8x8xf32> -> vector<8x8xf32>
    %110 = tpu.reciprocal %106 {approx = true} : vector<8x1xf32> -> vector<8x1xf32>
    %111 = vector.broadcast %110 : vector<8x1xf32> to vector<8x8xf32>
    %112 = arith.mulf %109, %111 : vector<8x8xf32>
    %113 = tpu.concatenate %52, %72, %92, %112 in 1 : vector<8x8xf32>, vector<8x8xf32>, vector<8x8xf32>, vector<8x8xf32> -> vector<8x32xf32>
    %c0_34 = arith.constant 0 : index
    %c0_35 = arith.constant 0 : index
    %114 = vector.load %arg7[%c0_34, %c0_35] : memref<1x32xf32, #tpu.memory_space<vmem>>, vector<1x32xf32>
    %c0_36 = arith.constant 0 : index
    %c0_37 = arith.constant 0 : index
    %115 = vector.load %arg8[%c0_36, %c0_37] : memref<1x32xf32, #tpu.memory_space<vmem>>, vector<1x32xf32>
    %cst_38 = arith.constant dense<0.000000e+00> : vector<8xf32>
    %116 = vector.multi_reduction <add>, %1, %cst_38 [1] : vector<8x32xf32> to vector<8xf32>
    %117 = vector.shape_cast %116 : vector<8xf32> to vector<8x1xf32>
    %cst_39 = arith.constant 3.200000e+01 : f32
    %118 = vector.broadcast %cst_39 : f32 to vector<8x1xf32>
    %119 = arith.divf %117, %118 : vector<8x1xf32>
    %120 = vector.broadcast %119 : vector<8x1xf32> to vector<8x32xf32>
    %121 = arith.subf %1, %120 : vector<8x32xf32>
    %122 = arith.mulf %121, %121 : vector<8x32xf32>
    %cst_40 = arith.constant dense<0.000000e+00> : vector<8xf32>
    %123 = vector.multi_reduction <add>, %122, %cst_40 [1] : vector<8x32xf32> to vector<8xf32>
    %124 = vector.shape_cast %123 : vector<8xf32> to vector<8x1xf32>
    %cst_41 = arith.constant 3.200000e+01 : f32
    %125 = vector.broadcast %cst_41 : f32 to vector<8x1xf32>
    %126 = arith.divf %124, %125 : vector<8x1xf32>
    %cst_42 = arith.constant 9.99999974E-6 : f32
    %127 = vector.broadcast %cst_42 : f32 to vector<8x1xf32>
    %128 = arith.addf %126, %127 : vector<8x1xf32>
    %129 = math.rsqrt %128 : vector<8x1xf32>
    %130 = vector.broadcast %129 : vector<8x1xf32> to vector<8x32xf32>
    %131 = arith.mulf %121, %130 : vector<8x32xf32>
    %132 = vector.broadcast %114 : vector<1x32xf32> to vector<8x32xf32>
    %133 = arith.mulf %131, %132 : vector<8x32xf32>
    %134 = vector.broadcast %115 : vector<1x32xf32> to vector<8x32xf32>
    %135 = arith.addf %133, %134 : vector<8x32xf32>
    %136 = arith.truncf %135 : vector<8x32xf32> to vector<8x32xbf16>
    %c0_43 = arith.constant 0 : index
    %c0_44 = arith.constant 0 : index
    %137 = vector.load %arg9[%c0_43, %c0_44] : memref<32x128xbf16, #tpu.memory_space<vmem>>, vector<32x128xbf16>
    %cst_45 = arith.constant dense<0.000000e+00> : vector<8x128xf32>
    %138 = tpu.matmul %136, %137, %cst_45 {dimension_numbers = #tpu.dot_dimension_numbers<[1], [0], [0], [1], [0, 0, 1, 1], [], []>} : vector<8x32xbf16>, vector<32x128xbf16>, vector<8x128xf32> -> vector<8x128xf32>
    %c0_46 = arith.constant 0 : index
    %c0_47 = arith.constant 0 : index
    %139 = vector.load %arg10[%c0_46, %c0_47] : memref<1x128xf32, #tpu.memory_space<vmem>>, vector<1x128xf32>
    %140 = vector.broadcast %139 : vector<1x128xf32> to vector<8x128xf32>
    %141 = arith.addf %138, %140 : vector<8x128xf32>
    %cst_48 = arith.constant 0.000000e+00 : f32
    %142 = vector.broadcast %cst_48 : f32 to vector<8x128xf32>
    %143 = arith.maximumf %141, %142 : vector<8x128xf32>
    %144 = arith.truncf %143 : vector<8x128xf32> to vector<8x128xbf16>
    %c0_49 = arith.constant 0 : index
    %c0_50 = arith.constant 0 : index
    %145 = vector.load %arg11[%c0_49, %c0_50] : memref<128x32xbf16, #tpu.memory_space<vmem>>, vector<128x32xbf16>
    %cst_51 = arith.constant dense<0.000000e+00> : vector<8x32xf32>
    %146 = tpu.matmul %144, %145, %cst_51 {dimension_numbers = #tpu.dot_dimension_numbers<[1], [0], [0], [1], [0, 0, 1, 1], [], []>} : vector<8x128xbf16>, vector<128x32xbf16>, vector<8x32xf32> -> vector<8x32xf32>
    %c0_52 = arith.constant 0 : index
    %c0_53 = arith.constant 0 : index
    %147 = vector.load %arg12[%c0_52, %c0_53] : memref<1x32xf32, #tpu.memory_space<vmem>>, vector<1x32xf32>
    %148 = vector.broadcast %147 : vector<1x32xf32> to vector<8x32xf32>
    %149 = arith.addf %146, %148 : vector<8x32xf32>
    %150 = arith.addf %1, %113 : vector<8x32xf32>
    %151 = arith.addf %150, %149 : vector<8x32xf32>
    %c0_54 = arith.constant 0 : index
    %c0_55 = arith.constant 0 : index
    %c0_56 = arith.constant 0 : index
    %152 = vector.load %arg13[%c0_54, %c0_55, %c0_56] : memref<1x8x32xf32, #tpu.memory_space<vmem>>, vector<1x8x32xf32>
    %153 = vector.shape_cast %152 : vector<1x8x32xf32> to vector<8x32xf32>
    %154 = vector.shape_cast %151 : vector<8x32xf32> to vector<1x8x32xf32>
    tpu.vector_store %arg13[%c0_54, %c0_55, %c0_56], %154 {strides = array<i32>} : memref<1x8x32xf32, #tpu.memory_space<vmem>>, vector<1x8x32xf32>,
    return
  }
  func.func @transform_0(%arg0: i32) -> (i32, i32, i32) {
    %c0_i32 = arith.constant 0 : i32
    %c0_i32_0 = arith.constant 0 : i32
    %c0_i32_1 = arith.constant 0 : i32
    return %arg0, %c0_i32, %c0_i32_0 : i32, i32, i32
  }
  func.func @transform_1(%arg0: i32) -> (i32, i32) {
    %c0_i32 = arith.constant 0 : i32
    %c0_i32_0 = arith.constant 0 : i32
    %c0_i32_1 = arith.constant 0 : i32
    return %c0_i32, %c0_i32_0 : i32, i32
  }
  func.func @transform_2(%arg0: i32) -> (i32, i32) {
    %c0_i32 = arith.constant 0 : i32
    %c0_i32_0 = arith.constant 0 : i32
    %c0_i32_1 = arith.constant 0 : i32
    return %c0_i32, %c0_i32_0 : i32, i32
  }
  func.func @transform_3(%arg0: i32) -> (i32, i32) {
    %c0_i32 = arith.constant 0 : i32
    %c0_i32_0 = arith.constant 0 : i32
    %c0_i32_1 = arith.constant 0 : i32
    return %c0_i32, %c0_i32_0 : i32, i32
  }
  func.func @transform_4(%arg0: i32) -> (i32, i32) {
    %c0_i32 = arith.constant 0 : i32
    %c0_i32_0 = arith.constant 0 : i32
    %c0_i32_1 = arith.constant 0 : i32
    return %c0_i32, %c0_i32_0 : i32, i32
  }
  func.func @transform_5(%arg0: i32) -> (i32, i32, i32) {
    %c0_i32 = arith.constant 0 : i32
    %c0_i32_0 = arith.constant 0 : i32
    %c0_i32_1 = arith.constant 0 : i32
    return %arg0, %c0_i32, %c0_i32_0 : i32, i32, i32
  }
  func.func @transform_6(%arg0: i32) -> (i32, i32) {
    %c0_i32 = arith.constant 0 : i32
    %c0_i32_0 = arith.constant 0 : i32
    %c0_i32_1 = arith.constant 0 : i32
    return %c0_i32, %c0_i32_0 : i32, i32
  }
  func.func @transform_7(%arg0: i32) -> (i32, i32) {
    %c0_i32 = arith.constant 0 : i32
    %c0_i32_0 = arith.constant 0 : i32
    %c0_i32_1 = arith.constant 0 : i32
    return %c0_i32, %c0_i32_0 : i32, i32
  }
  func.func @transform_8(%arg0: i32) -> (i32, i32) {
    %c0_i32 = arith.constant 0 : i32
    %c0_i32_0 = arith.constant 0 : i32
    %c0_i32_1 = arith.constant 0 : i32
    return %c0_i32, %c0_i32_0 : i32, i32
  }
  func.func @transform_9(%arg0: i32) -> (i32, i32) {
    %c0_i32 = arith.constant 0 : i32
    %c0_i32_0 = arith.constant 0 : i32
    %c0_i32_1 = arith.constant 0 : i32
    return %c0_i32, %c0_i32_0 : i32, i32
  }
  func.func @transform_10(%arg0: i32) -> (i32, i32) {
    %c0_i32 = arith.constant 0 : i32
    %c0_i32_0 = arith.constant 0 : i32
    %c0_i32_1 = arith.constant 0 : i32
    return %c0_i32, %c0_i32_0 : i32, i32
  }
  func.func @transform_11(%arg0: i32) -> (i32, i32) {
    %c0_i32 = arith.constant 0 : i32
    %c0_i32_0 = arith.constant 0 : i32
    %c0_i32_1 = arith.constant 0 : i32
    return %c0_i32, %c0_i32_0 : i32, i32
  }
  func.func @transform_12(%arg0: i32) -> (i32, i32, i32) {
    %c0_i32 = arith.constant 0 : i32
    %c0_i32_0 = arith.constant 0 : i32
    %c0_i32_1 = arith.constant 0 : i32
    return %arg0, %c0_i32, %c0_i32_0 : i32, i32, i32
  }
}

</mosaic_0001>

<bundles_post_ra>
// kernel: tpu_custom_call.1
= control target key start
LH: loop header
LB: loop body
LE: loop exit
PB: predicated region body
PF: predicated region fallthrough
CT: control target
= control target key end

     0   :  { %s1477_s0 = inlined_call_operand.vmem [shape: f32[2,8,32], index: 0, kind: input, shape index: {}]   ;;  %s1478_s1 = inlined_call_operand.vmem [shape: f32[1,32], index: 1, kind: input, shape index: {}]   ;;  %s1479_s2 = inlined_call_operand.vmem [shape: f32[1,32], index: 2, kind: input, shape index: {}]   ;;  %s1480_s3 = inlined_call_operand.vmem [shape: bf16[32,96], index: 3, kind: input, shape index: {}]   ;;  %s1481_s4 = inlined_call_operand.vmem [shape: f32[1,96], index: 4, kind: input, shape index: {}]   ;;  %s1482_s5 = inlined_call_operand.vmem [shape: bf16[2,8,8], index: 5, kind: input, shape index: {}]   ;;  %s1483_s6 = inlined_call_operand.vmem [shape: f32[1,32], index: 6, kind: input, shape index: {}]   ;;  %s1484_s7 = inlined_call_operand.vmem [shape: f32[1,32], index: 7, kind: input, shape index: {}]   ;;  %s1485_s8 = inlined_call_operand.vmem [shape: bf16[32,128], index: 8, kind: input, shape index: {}]   ;;  %s1486_s9 = inlined_call_operand.vmem [shape: f32[1,128], index: 9, kind: input, shape index: {}]   ;;  %s1487_s10 = inlined_call_operand.vmem [shape: bf16[128,32], index: 10, kind: input, shape index: {}]   ;;  %s1488_s11 = inlined_call_operand.vmem [shape: f32[1,32], index: 11, kind: input, shape index: {}]   ;;  %s1489_s12 = inlined_call_operand.hbm [shape: f32[2,8,32], index: 12, kind: output, shape index: {}]  }
   0x1   :  { %1490 = sst [smem:[#allocation5_spill]] %s1477_s0 }
   0x2   :  { %1491 = sst [smem:[#allocation6_spill]] %s1478_s1 }
   0x3   :  { %17 = vsyncpa [#allocation3], 0 }
   0x4   :  { %19 = vsyncpa [#allocation3 + $0x1], 0  ;;  %s1276_s21 = smov 0   ;;  %s1278_s22 = smov 0  }
   0x5   :  { %s1280_s23 = smov 0   ;;  %s1282_s24 = smov 0  }
   0x6 LB: > { %s1297_s25 = sadd.s32 4294967295, %s1194_s24   ;;  %s970_s26 = sadd.s32 4294967294, %s1194_s24   ;;  %s1194_s24 = sphi %s1282_s24, %s1499_s24   ;;  %s1190_s23 = sphi %s1280_s23, %s1498_s23   ;;  %s1186_s22 = sphi %s1278_s22, %s1497_s22   ;;  %s1182_s21 = sphi %s1276_s21, %s1496_s21  }
   0x7   : > { %s1301_s27 = sadd.s32 1, %s1194_s24   ;;  %s294_s28 = sadd.s32 1, %s1190_s23 }
   0x8   : > { %s291_s29 = ssub.s32 %s1194_s24, %s1301_s27  ;;  %p304_p0 = scmp.ne.s32.totalorder %s1190_s23, %s1186_s22 }
   0x9   : > { %p292_p1 = scmp.eq.s32.totalorder %s291_s29, 0  ;;  %p305_p2 = scmp.eq.s32.totalorder %s1297_s25, 1 }
   0xa   : > { %p310_p3 = scmp.ne.s32.totalorder %s1186_s22, %s1182_s21  ;;  %p311_p4 = scmp.eq.s32.totalorder %s970_s26, 1 }
   0xb   : > { %s1312_s30 = scalar_select %p292_p1, %s1190_s23, %s294_s28  }
   0xc   : > { %p1314_p5 = por %p305_p2, %p304_p0  ;;  %p1318_p6 = por %p311_p4, %p310_p3 }
   0xd   : > { %p973_p7 = scmp.ge.s32.totalorder %s1194_s24, 1  ;;  %p373_p8 = scmp.lt.s32.totalorder %s1194_s24, 3 }
   0xf   : > { %p374_p9 = pnand %p973_p7, %p373_p8 }
  0x10   : > { %p418_p10 = scmp.lt.s32.totalorder (!%p374_p9), %s1297_s25, 1  ;;  %s1494_s0 = sld [smem:[#allocation5_spill]] (!%p374_p9) }
  0x11   : > { %377 = sbr.rel (%p374_p9) target bundleno = 1107 (0x453), region = 68  ;;  %s1495_s1 = sld [smem:[#allocation6_spill]] (!%p374_p9) }
  0x12   : > { %s1197_s28 = smov (!%p374_p9), 104   ;;  %s1198_s29 = smov (!%p374_p9), 120  }
  0x13   : > { %s1200_s17 = smov (!%p374_p9), 56   ;;  %s1201_s18 = smov (!%p374_p9), 72  }
  0x14   : > { %s1203_s20 = smov (!%p374_p9), 112   ;;  %s1204_s26 = smov (!%p374_p9), 80  }
  0x16   : > { %s1326_s15 = scalar_select %p418_p10, %s1297_s25, 1  ;;  %vm430_vm0 = vcmask 261120   ;;  %v1196_v2 = vmov 32.0   ;;  %v1040_v14 = vld [vmem:[%s1480_s3 + $0x8] sm:$0xff]  ;;  %v1039_v15 = vld [vmem:[%s1480_s3] sm:$0xff]  ;;  %vm546_vm5 = vcmask 1043456  }
  0x17   : > { %1112 = vrcp.f32 %v1196_v2  ;;  %498 = vmatpush.bf16.msra.mxu0 %v1040_v14  ;;  %v1105_v25 = vld [vmem:[%s1495_s1] ss:$0 sm:$0xff]  ;;  %vm511_vm6 = vcmask 64512   ;;  %v1042_v50 = vld [vmem:[%s1485_s8 + $0x8] sm:$0xff]  ;;  %vm746_vm7 = vcmask 130048   ;;  %vm748_vm8 = vcmask 195584  }
  0x18   : > { %s975_s16 = sshll.u32 %s1326_s15, 3  ;;  %v1106_v28 = vld [vmem:[%s1479_s2] ss:$0 sm:$0xff] }
  0x19   : > { %s421_s19 = scalar_lea.vmem %s1494_s0, %s975_s16  ;;  %v1108_v32 = vld [vmem:[%s1481_s4] ss:$0 sm:$0xff]  ;;  %s1199_s16 = smov 96  }
  0x1a   : > { %v1332_v0 = vld [vmem:[%s421_s19] sm:$0xff]  ;;  %s1202_s19 = smov 88  }
  0x1b   : > { %v431_v1 = vsel %vm430_vm0, %v1332_v0, 0.0  ;;  %499 = vmatpush.bf16.msra.mxu0 %v1039_v15  ;;  %v1041_v53 = vld [vmem:[%s1485_s8] sm:$0xff] }
  0x1c   : > { %432 = vadd.xlane.f32.xlu0 %v431_v1  ;;  %v1107_v54 = vld [vmem:[%s1483_s6] ss:$0 sm:$0xff] }
  0x1d   : > { %v1113_v3 = vpop.eup %1112  ;;  %v1109_v56 = vld [vmem:[%s1484_s7] ss:$0 sm:$0xff] }
  0x1e   : > { %v435_v4 = vmul.f32 32.0, %v1113_v3  ;;  %vm439_vm1 = vweird.f32 %v1113_v3 }
  0x20   : > { %v436_v5 = vsub.f32 1.0, %v435_v4 }
  0x22   : > { %v437_v6 = vmul.f32 %v1113_v3, %v436_v5 }
  0x24   : > { %v438_v7 = vadd.f32 %v1113_v3, %v437_v6 }
  0x26   : > { %v440_v8 = vsel %vm439_vm1, %v1113_v3, %v438_v7 }
  0x8f   : > { %v433_v9 = vpop.xlane.xlu0 %432 }
  0x90   : > { %v441_v10 = vmul.f32 %v440_v8, %v433_v9 }
  0x92   : > { %v442_v11 = vsub.f32 %v1332_v0, %v441_v10 }
  0x94   : > { %v443_v12 = vmul.f32 %v442_v11, %v442_v11 }
  0x96   : > { %v444_v13 = vsel %vm430_vm0, %v443_v12, 0.0 }
  0x97   : > { %445 = vadd.xlane.f32.xlu0 %v444_v13 }
 0x10a   : > { %v446_v16 = vpop.xlane.xlu0 %445 }
 0x10b   : > { %v447_v17 = vmul.f32 %v446_v16, %v440_v8 }
 0x10d   : > { %v448_v18 = vadd.f32 1e-05, %v447_v17 }
 0x10f   : > { %1114 = vrsqrt.f32 %v448_v18  ;;  %vm455_vm3 = vweird.f32 %v448_v18 }
 0x115   : > { %v1115_v19 = vpop.eup %1114 }
 0x116   : > { %v450_v20 = vmul.f32 %v1115_v19, %v448_v18  ;;  %vm456_vm2 = vweird.f32 %v1115_v19 }
 0x117   : > { %vm457_vm4 = vmor %vm455_vm3, %vm456_vm2 }
 0x118   : > { %v451_v21 = vmul.f32 %v1115_v19, %v450_v20 }
 0x11a   : > { %v452_v22 = vmul.f32 0.5, %v451_v21 }
 0x11c   : > { %v453_v23 = vsub.f32 1.5, %v452_v22 }
 0x11e   : > { %v454_v24 = vmul.f32 %v1115_v19, %v453_v23 }
 0x120   : > { %v458_v26 = vsel %vm457_vm4, %v1115_v19, %v454_v24 }
 0x121   : > { %v459_v27 = vmul.f32 %v458_v26, %v442_v11 }
 0x123   : > { %v463_v29 = vmul.f32 %v1105_v25, %v459_v27  ;;  %v755_v55 = vmul.f32 %v1107_v54, %v459_v27 }
 0x125   : > { %v467_v30 = vadd.f32 %v1106_v28, %v463_v29  ;;  %v759_v57 = vadd.f32 %v1109_v56, %v755_v55 }
 0x127   : > { %v468_v31 = vpack.c.bf16 %v467_v30, %v467_v30  ;;  %v760_v58 = vpack.c.bf16 %v759_v57, %v759_v57 }
 0x129   : > { %985 = vmatmul.msk.bf16.vlgmr.msra.gmra.mxu0 %vm430_vm0, %v468_v31 }
 0x1a6   : > { %v501_v33 = vpop.f32.mrf.mxu0 }
 0x1a7   : > { %v502_v34 = vadd.f32 %v1108_v32, %v501_v33 }
 0x1a9   : > { %v1354_v35 = vpack.c.bf16 %v502_v34, %v502_v34 }
 0x1ab   : > { %677 = vrot.lane.b32.xlu0 %v1354_v35, %s1197_s28  ;;  %565 = vrot.lane.b32.xlu2 %v1354_v35, %s1198_s29  ;;  %s1205_s28 = smov 64   ;;  %s976_s29 = sshll.u32 %s1326_s15, 2 }
 0x1ac   : > { %509 = vrot.lane.b32.xlu1 %v1354_v35, %s1199_s16  ;;  %s1206_s15 = smov 48  }
 0x1ae   : > { %v503_v36 = vpop.f32.mrf.mxu0 }
 0x1b3   : > { %598 = vrot.lane.b32.xlu0 %v1354_v35, %s1200_s17  ;;  %679 = vrot.lane.b32.xlu2 %v1354_v35, %s1201_s18  ;;  %s425_s18 = scalar_lea.vmem %s1482_s5, %s976_s29  ;;  %s415_s29 = sand.u32 1, %s1186_s22  }
 0x1b4   : > { %567 = vrot.lane.b32.xlu1 %v1354_v35, %s1202_s19  ;;  %v505_v59 = vld [vmem:[%s425_s18] sm:$0xf]  ;;  %s1207_s19 = smov 40   ;;  %s974_s16 = sshll.u32 %s415_s29, 3 }
 0x1b5   : > { %v506_v60 = vunpack.c.l.bf16 %v505_v59  ;;  %s1036_s17 = sshll.u32 %s1297_s25, 3  ;;  %s884_s25 = scalar_lea.sflag [#allocation3], %s415_s29 }
 0x1bb   : > { %621 = vrot.lane.b32.xlu2 %v1354_v35, %s1203_s20  ;;  %s1208_s20 = smov 16  }
 0x1bc   : > { %623 = vrot.lane.b32.xlu1 %v1354_v35, %s1204_s26  ;;  %s1209_s26 = smov 8  }
 0x1c3   : > { %541 = vrot.lane.b32.xlu2 %v1354_v35, %s1205_s28  ;;  %s1210_s28 = smov 24  }
 0x205   : > { %v566_v37 = vpop.permute.xlu2 %565 }
 0x20d   : > { %v680_v38 = vpop.permute.xlu2 %679 }
 0x20e   : > { %v685_v49 = vsel %vm511_vm6, %v680_v38, 0 }
 0x215   : > { %v622_v39 = vpop.permute.xlu2 %621 }
 0x21d   : > { %v678_v40 = vpop.permute.xlu0 %677  ;;  %v542_v41 = vpop.permute.xlu2 %541 }
 0x21e   : > { %v510_v42 = vpop.permute.xlu1 %509  ;;  %v548_v43 = vsel %vm546_vm5, %v542_v41, 0 }
 0x21f   : > { %v516_v44 = vsel %vm511_vm6, %v510_v42, 0  ;;  %557 = vmatpush.bf16.msra.mxu2 %v548_v43  ;;  %v1049_v42 = vld [vmem:[%s1487_s10 + $0x30] sm:$0xff]  ;;  %v1048_v43 = vld [vmem:[%s1487_s10 + $0x28] sm:$0xff] }
 0x220   : > { %525 = vmatpush.bf16.xpose.msra.mxu3 %v516_v44 }
 0x225   : > { %v599_v45 = vpop.permute.xlu0 %598 }
 0x226   : > { %v568_v46 = vpop.permute.xlu1 %567  ;;  %v604_v47 = vsel %vm546_vm5, %v599_v45, 0 }
 0x227   : > { %986 = vmatmul.msk.bf16.vlgmr.msra.gmra.mxu3 %vm511_vm6, %v1354_v35  ;;  %v573_v48 = vsel %vm511_vm6, %v568_v46, 0  ;;  %613 = vmatpush.bf16.msrb.mxu2 %v604_v47  ;;  %v1047_v47 = vld [vmem:[%s1487_s10 + $0x20] sm:$0xff] }
 0x228   : > { %582 = vmatpush.bf16.xpose.msrb.mxu3 %v573_v48  ;;  %v1046_v48 = vld [vmem:[%s1487_s10 + $0x18] sm:$0xff] }
 0x22e   : > { %v624_v51 = vpop.permute.xlu1 %623 }
 0x22f   : > { %v629_v52 = vsel %vm511_vm6, %v624_v51, 0  ;;  %v1044_v51 = vld [vmem:[%s1487_s10 + $0x8] sm:$0xff] }
 0x230   : > { %694 = vmatpush.bf16.xpose.msra.mxu3 %v685_v49  ;;  %638 = vmatpush.bf16.xpose.msrb.mxu0 %v629_v52  ;;  %v1045_v49 = vld [vmem:[%s1487_s10 + $0x10] sm:$0xff] }
 0x237   : > { %988 = vmatmul.msk.bf16.vlgmr.msrb.gmra.mxu3 %vm511_vm6, %v566_v37  ;;  %990 = vmatmul.msk.bf16.vlgmr.msrb.gmra.mxu0 %vm511_vm6, %v622_v39  ;;  %v1050_v37 = vld [vmem:[%s1487_s10 + $0x38] sm:$0xff] }
 0x238   : > { %790 = vmatpush.bf16.msra.mxu0 %v1042_v50  ;;  %v1110_v50 = vld [vmem:[%s1486_s9] ss:$0 sm:$0xff] }
 0x23c   : > { %791 = vmatpush.bf16.msra.mxu0 %v1041_v53  ;;  %v1043_v53 = vld [vmem:[%s1487_s10] sm:$0xff] }
 0x247   : > { %992 = vmatmul.msk.bf16.vlgmr.msra.gmra.mxu3 %vm511_vm6, %v678_v40  ;;  %1002 = vmatmul.msk.bf16.vlgmr.msra.gmra.mxu0 %vm430_vm0, %v760_v58 }
 0x2aa   : > { %v527_v61 = vpop.f32.mrf.mxu3 }
 0x2ab   : > { %v528_v62 = vadd.f32 %v527_v61, %v506_v60 }
 0x2ad   : > { %v531_v63 = vsel %vm511_vm6, %v528_v62, -inf }
 0x2ae   : > { %532 = vmax.xlane.f32.xlu1 %v531_v63 }
 0x2b2   : > { %v529_v1 = vpop.f32.mrf.mxu3 }
 0x2b4   : > { %v640_v2 = vpop.f32.mrf.mxu0 }
 0x2b5   : > { %v641_v3 = vadd.f32 %v640_v2, %v506_v60 }
 0x2b7   : > { %v644_v4 = vsel %vm511_vm6, %v641_v3, -inf }
 0x2b8   : > { %645 = vmax.xlane.f32.xlu1 %v644_v4 }
 0x2ba   : > { %v584_v5 = vpop.f32.mrf.mxu3 }
 0x2bb   : > { %v585_v6 = vadd.f32 %v584_v5, %v506_v60 }
 0x2bc   : > { %v642_v7 = vpop.f32.mrf.mxu0 }
 0x2bd   : > { %v588_v8 = vsel %vm511_vm6, %v585_v6, -inf }
 0x2be   : > { %589 = vmax.xlane.f32.xlu2 %v588_v8 }
 0x2c2   : > { %v586_v9 = vpop.f32.mrf.mxu3 }
 0x2c4   : > { %v1396_v10 = vpop.f32.mrf.mxu0 }
 0x2c5   : > { %v794_v52 = vadd.f32 %v1110_v50, %v1396_v10 }
 0x2c7   : > { %v797_v54 = vmax.f32 %v794_v52, 0.0 }
 0x2c9   : > { %v798_v55 = vpack.c.bf16 %v797_v54, %v797_v54 }
 0x2ca   : > { %v696_v11 = vpop.f32.mrf.mxu3 }
 0x2cb   : > { %v697_v12 = vadd.f32 %v696_v11, %v506_v60 }
 0x2cc   : > { %v795_v13 = vpop.f32.mrf.mxu0 }
 0x2cd   : > { %v700_v14 = vsel %vm511_vm6, %v697_v12, -inf }
 0x2ce   : > { %701 = vmax.xlane.f32.xlu0 %v700_v14 }
 0x2d1   : > { %654 = vrot.lane.b32.xlu1 %v1354_v35, %s1206_s15 }
 0x2d2   : > { %v698_v15 = vpop.f32.mrf.mxu3 }
 0x2d6   : > { %710 = vrot.lane.b32.xlu2 %v1354_v35, %s1207_s19  ;;  %s1152_s19 = scalar_lea.hbm %s1489_s12, 16 }
 0x321   : > { %v533_v16 = vpop.xlane.xlu1 %532 }
 0x322   : > { %v534_v17 = vsub.f32 %v528_v62, %v533_v16 }
 0x324   : > { %v535_v18 = vmul.f32 1.442695, %v534_v17 }
 0x326   : > { %1116 = vpow2.f32 %v535_v18  ;;  %v1111_v18 = vld [vmem:[%s1488_s11] ss:$0 sm:$0xff] }
 0x32b   : > { %v646_v19 = vpop.xlane.xlu1 %645 }
 0x32c   : > { %v1117_v20 = vpop.eup %1116  ;;  %v647_v21 = vsub.f32 %v641_v3, %v646_v19 }
 0x32d   : > { %v537_v22 = vsel %vm511_vm6, %v1117_v20, 0.0  ;;  %v540_v23 = vpack.c.bf16 %v1117_v20, %v1117_v20 }
 0x32e   : > { %v648_v24 = vmul.f32 1.442695, %v647_v21  ;;  %538 = vadd.xlane.f32.xlu1 %v537_v22 }
 0x32f   : > { %987 = vmatmul.msk.bf16.vlgmr.msra.gmra.mxu2 %vm511_vm6, %v540_v23 }
 0x330   : > { %1118 = vpow2.f32 %v648_v24 }
 0x331   : > { %v590_v25 = vpop.xlane.xlu2 %589 }
 0x332   : > { %v591_v26 = vsub.f32 %v585_v6, %v590_v25 }
 0x334   : > { %v592_v27 = vmul.f32 1.442695, %v591_v26 }
 0x336   : > { %v1119_v28 = vpop.eup %1118  ;;  %1120 = vpow2.f32 %v592_v27 }
 0x337   : > { %v650_v29 = vsel %vm511_vm6, %v1119_v28, 0.0  ;;  %v653_v41 = vpack.c.bf16 %v1119_v28, %v1119_v28 }
 0x338   : > { %651 = vadd.xlane.f32.xlu0 %v650_v29 }
 0x339   : > { %v711_v30 = vpop.permute.xlu2 %710 }
 0x33a   : > { %v716_v31 = vsel %vm546_vm5, %v711_v30, 0 }
 0x33b   : > { %725 = vmatpush.bf16.msra.mxu2 %v716_v31 }
 0x33c   : > { %v1121_v32 = vpop.eup %1120 }
 0x33d   : > { %v597_v33 = vpack.c.bf16 %v1121_v32, %v1121_v32  ;;  %v594_v34 = vsel %vm511_vm6, %v1121_v32, 0.0 }
 0x33f   : > { %989 = vmatmul.msk.bf16.vlgmr.msrb.gmra.mxu2 %vm511_vm6, %v597_v33 }
 0x340   : > { %595 = vadd.xlane.f32.xlu0 %v594_v34 }
 0x341   : > { %v702_v35 = vpop.xlane.xlu0 %701 }
 0x342   : > { %v703_v36 = vsub.f32 %v697_v12, %v702_v35 }
 0x343   : > { %v655_v38 = vpop.permute.xlu1 %654 }
 0x344   : > { %v704_v39 = vmul.f32 1.442695, %v703_v36  ;;  %v660_v40 = vsel %vm546_vm5, %v655_v38, 0 }
 0x345   : > { %669 = vmatpush.bf16.msra.mxu1 %v660_v40 }
 0x346   : > { %1122 = vpow2.f32 %v704_v39 }
 0x348   : > { %991 = vmatmul.msk.bf16.vlgmr.msra.gmra.mxu1 %vm511_vm6, %v653_v41 }
 0x349   : > { %867 = vmatpush.bf16.msrb.mxu1 %v1050_v37 }
 0x34c   : > { %v1123_v44 = vpop.eup %1122 }
 0x34d   : > { %868 = vmatpush.bf16.msrb.mxu1 %v1049_v42  ;;  %v709_v45 = vpack.c.bf16 %v1123_v44, %v1123_v44  ;;  %v706_v46 = vsel %vm511_vm6, %v1123_v44, 0.0 }
 0x34e   : > { %707 = vadd.xlane.f32.xlu2 %v706_v46 }
 0x34f   : > { %993 = vmatmul.msk.bf16.vlgmr.msra.gmra.mxu2 %vm511_vm6, %v709_v45 }
 0x351   : > { %869 = vmatpush.bf16.msrb.mxu1 %v1048_v43 }
 0x355   : > { %870 = vmatpush.bf16.msrb.mxu1 %v1047_v47 }
 0x359   : > { %871 = vmatpush.bf16.msrb.mxu1 %v1046_v48 }
 0x35d   : > { %872 = vmatpush.bf16.msrb.mxu1 %v1045_v49 }
 0x361   : > { %873 = vmatpush.bf16.msrb.mxu1 %v1044_v51 }
 0x365   : > { %874 = vmatpush.bf16.msrb.mxu1 %v1043_v53 }
 0x368   : > { %875 = vmatmul.bf16.vlgmr.msrb.gmra.mxu1 %v798_v55 }
 0x3a1   : > { %v539_v13 = vpop.xlane.xlu1 %538 }
 0x3ab   : > { %v652_v57 = vpop.xlane.xlu0 %651 }
 0x3ac   : > { %1124 = vrcp.f32 %v652_v57 }
 0x3b2   : > { %v559_v56 = vpop.f32.mrf.mxu2  ;;  %v1125_v61 = vpop.eup %1124 }
 0x3b3   : > { %v596_v60 = vpop.xlane.xlu0 %595 }
 0x3b4   : > { %1126 = vrcp.f32 %v596_v60 }
 0x3ba   : > { %v561_v58 = vpop.f32.mrf.mxu2  ;;  %v1127_v3 = vpop.eup %1126 }
 0x3c1   : > { %v708_v2 = vpop.xlane.xlu2 %707 }
 0x3c2   : > { %v615_v59 = vpop.f32.mrf.mxu2  ;;  %1128 = vrcp.f32 %v708_v2 }
 0x3c3   : > { %v620_v5 = vmul.f32 %v1127_v3, %v615_v59  ;;  %1130 = vrcp.f32 %v539_v13 }
 0x3c5   : > { %v671_v62 = vpop.f32.mrf.mxu1 }
 0x3c6   : > { %v676_v63 = vmul.f32 %v1125_v61, %v671_v62 }
 0x3c8   : > { %738 = vrot.lane.b32.xlu0 %v676_v63, %s1208_s20  ;;  %v1129_v7 = vpop.eup %1128 }
 0x3c9   : > { %v1131_v15 = vpop.eup %1130 }
 0x3ca   : > { %v617_v1 = vpop.f32.mrf.mxu2  ;;  %v564_v16 = vmul.f32 %v1131_v15, %v559_v56 }
 0x3cd   : > { %v673_v4 = vpop.f32.mrf.mxu1 }
 0x3d0   : > { %734 = vrot.lane.b32.xlu0 %v620_v5, %s1209_s26  ;;  %s894_s26 = scalar_lea.hbm %s1489_s12, %s1036_s17 }
 0x3d1   : > { %s898_s1 = sshll.u32 %s894_s26, 4  ;;  %s899_s1 = int_to_ptr.hbm [resolvable:$true] %s898_s1 }
 0x3d2   : > { %v727_v6 = vpop.f32.mrf.mxu2  ;;  %s1146_s18 = sshra.s32 %s899_s1, 4  ;;  %s1147_s18 = int_to_ptr.hbm [resolvable:$true] %s1146_s18 }
 0x3d3   : > { %v732_v8 = vmul.f32 %v1129_v7, %v727_v6  ;;  %s1148_s15 = scalar_lea.hbm %s1147_s18, 8  ;;  %p1153_p0 = scmp.lt.s32.totalorder %s1147_s18, %s1489_s12 }
 0x3d4   : > { %p1149_p11 = scmp.ne.s32.totalorder %s1147_s18, %s1148_s15  ;;  %p1154_p1 = scmp.lt.s32.totalorder %s1152_s19, %s1148_s15 }
 0x3d6   : > { %p1150_p12 = pnand %p1149_p11, %p1314_p5  ;;  %p1155_p2 = por %p1154_p1, %p1153_p0 }
 0x3d8   : > { %742 = vrot.lane.b32.xlu0 %v732_v8, %s1210_s28  ;;  %s417_s28 = scalar_lea.vmem [#allocation2], %s974_s16  ;;  %p1151_p13 = pneg %p1150_p12 }
 0x3d9   : > { %s896_s0 = sshll.u32 %s417_s28, 4  ;;  %s897_s0 = int_to_ptr.vmem [resolvable:$true] %s896_s0 }
 0x3da   : > { %v729_v9 = vpop.f32.mrf.mxu2  ;;  %p1156_p3 = pnand %p1155_p2, %p1151_p13 }
 0x3e5   : > { %v876_v10 = vpop.f32.mrf.mxu1 }
 0x3e6   : > { %v877_v22 = vadd.f32 %v1111_v18, %v876_v10 }
 0x3ed   : > { %v878_v11 = vpop.f32.mrf.mxu1 }
 0x43a   : > { %v739_v12 = vpop.permute.xlu0 %738 }
 0x442   : > { %v735_v14 = vpop.permute.xlu0 %734 }
 0x443   : > { %v745_v17 = vsel %vm511_vm6, %v564_v16, %v735_v14 }
 0x444   : > { %v747_v20 = vsel %vm746_vm7, %v745_v17, %v739_v12 }
 0x44a   : > { %v743_v19 = vpop.permute.xlu0 %742 }
 0x44b   : > { %v749_v21 = vsel %vm748_vm8, %v747_v20, %v743_v19 }
 0x44c   : > { %v880_v23 = vadd.f32 %v749_v21, %v1332_v0 }
 0x44e   : > { %v881_v24 = vadd.f32 %v880_v23, %v877_v22 }
 0x450   : > { %882 = vst.msk [vmem:[%s417_s28] sm:$0xff] %vm430_vm0, %v881_v24 }
 0x451   : > { %1159 = shalt.err (!%p1156_p3)
}
 0x452   : > { %1051 = dma.vmem_to_hbm [thread:$0]  (%p1314_p5), %s897_s0, 128, %s899_s1, %s884_s25  }
 0x453 PF: > { %p1057_p4 = scmp.ge.s32.totalorder %s1194_s24, 2  ;;  %s910_s29 = sand.u32 1, %s1182_s21  }
 0x454   : > { %s911_s28 = scalar_lea.sflag [#allocation3], %s910_s29 }
 0x455   : > { %p1054_p7 = pnand %p1057_p4, %p1318_p6 }
 0x457   : > { %p1055_p8 = pneg %p1054_p7 }
 0x459   : > { %1177 = dma.done.wait (%p1055_p8), %s911_s28, 128  }
 0x45a   : > { %1179 = vsyncadd (%p1055_p8), %s911_s28, 4294967168  ;;  %p22_p9 = scmp.ge.s32.totalorder %s1301_s27, 4   ;;  %s1496_s21 = smov %s1186_s22 }
 0x45b   : > { %s1497_s22 = smov %s1190_s23  ;;  %s1498_s23 = smov %s1312_s30 }
 0x45c   : > { %s1499_s24 = smov %s1301_s27  ;;  %24 = sbr.rel (!%p22_p9) target bundleno = 6 (0x6), region = 106 }
 0x461   :  { %917 = vsyncpa [#allocation3], 1 }
 0x462   :  { %919 = vsyncpa [#allocation3 + $0x1], 1 }

</bundles_post_ra>
